<compile_context>
chip_gen: v7x
topology: tpu7x:2x2x1
jax: 0.10.0
libtpu: 0.0.40
codegen_flags: <defaults>
</compile_context>

<pallas_src>
import jax
import jax.numpy as jnp
from jax.experimental import pallas as pl
from jax.experimental.pallas import tpu as pltpu

CIN, COUT, KH, KW = 3, 6, 3, 3
LANE = 128
SUBLANE = 8


def _conv2d_matmul_kernel(w_ref, p_ref, b_ref, o_ref):
    # w_ref: (8, 27)    padded weight slab, K ordered (cin, kh, kw)
    # p_ref: (27, 512)  im2col patches, column index = n*Ho*Wo + pos (zero-padded)
    # b_ref: (8, 1)     padded bias (broadcasts over lanes)
    # o_ref: (8, 512)   padded output -> unmasked stores
    acc = jnp.dot(w_ref[...], p_ref[...], preferred_element_type=jnp.float32)
    o_ref[...] = (acc + b_ref[...]).astype(o_ref.dtype)


def _round_up(x, m):
    return ((x + m - 1) // m) * m


def conv2d_pallas(x_nchw, w_oihw, bias):
    """Valid conv, stride 1.  x_nchw: (N, Cin, H, W) f32 -> (N, Cout, Ho, Wo)."""
    n, cin, h, w = x_nchw.shape
    cout = w_oihw.shape[0]
    ho, wo = h - KH + 1, w - KW + 1
    k = cin * KH * KW
    ncols = n * ho * wo

    ncols_pad = _round_up(ncols, LANE)           # 392 -> 512
    cout_pad = _round_up(cout, SUBLANE)          # 6   -> 8

    # ---- wrapper-side im2col (plain XLA; K ordered (cin, kh, kw)) ----------
    wins = jnp.stack(
        [x_nchw[:, :, kh:kh + ho, kw:kw + wo] for kh in range(KH) for kw in range(KW)],
        axis=2)                                   # (N, Cin, KH*KW, Ho, Wo)
    patches = wins.reshape(n, k, ho * wo)         # (N, 27, Ho*Wo)
    patches = jnp.transpose(patches, (1, 0, 2)).reshape(k, ncols)   # (27, N*Ho*Wo)
    patches = jnp.pad(patches, ((0, 0), (0, ncols_pad - ncols)))    # (27, 512)

    # ---- weight / bias slabs (162 + 6 floats) -------------------------------
    w_mat = w_oihw.reshape(cout, k)                                  # (6, 27)
    w_mat = jnp.pad(w_mat, ((0, cout_pad - cout), (0, 0)))           # (8, 27)
    b2d = jnp.pad(bias.reshape(cout, 1), ((0, cout_pad - cout), (0, 0)))  # (8, 1)

    out_pad = pl.pallas_call(
        _conv2d_matmul_kernel,
        out_shape=jax.ShapeDtypeStruct((cout_pad, ncols_pad), x_nchw.dtype),
        in_specs=[
            pl.BlockSpec(memory_space=pltpu.MemorySpace.VMEM),
            pl.BlockSpec(memory_space=pltpu.MemorySpace.VMEM),
            pl.BlockSpec(memory_space=pltpu.MemorySpace.VMEM),
        ],
        out_specs=pl.BlockSpec(memory_space=pltpu.MemorySpace.VMEM),
    )(w_mat, patches, b2d)

    # Slice padding off and rearrange (Cout, N*Ho*Wo) -> (N, Cout, Ho, Wo).
    out = out_pad[:cout, :ncols].reshape(cout, n, ho, wo)
    return jnp.transpose(out, (1, 0, 2, 3))


if __name__ == "__main__":
    key = jax.random.PRNGKey(0)
    kx, kw_, kb = jax.random.split(key, 3)

    # Small deterministic synthetic inputs / params (shapes from module __init__).
    N, H, W = 2, 16, 16
    x = jax.random.normal(kx, (N, CIN, H, W), dtype=jnp.float32)
    # Mimic PyTorch default uniform(-1/sqrt(fan_in), 1/sqrt(fan_in)) init.
    fan_in = CIN * KH * KW
    bound = 1.0 / (fan_in ** 0.5)
    weight = jax.random.uniform(kw_, (COUT, CIN, KH, KW),
                                minval=-bound, maxval=bound, dtype=jnp.float32)
    bias = jax.random.uniform(kb, (COUT,),
                              minval=-bound, maxval=bound, dtype=jnp.float32)

    out = conv2d_pallas(x, weight, bias)
    out = jax.block_until_ready(out)

    # Cross-check against XLA's conv (same NCHW/OIHW semantics as PyTorch).
    ref = jax.lax.conv_general_dilated(
        x, weight, window_strides=(1, 1), padding="VALID",
        dimension_numbers=("NCHW", "OIHW", "NCHW"))
    ref = ref + bias.reshape(1, COUT, 1, 1)
    assert out.shape == (N, COUT, H - 2, W - 2)
    assert jnp.allclose(out, ref, rtol=1e-4, atol=1e-4)

    print("KERNEL_OK")
</pallas_src>

<mosaic_0001>
module attributes {stable_mosaic.version = 11 : i64} {
  func.func @_conv2d_matmul_kernel(%arg0: memref<8x27xf32, #tpu.memory_space<vmem>>, %arg1: memref<27x512xf32, #tpu.memory_space<vmem>>, %arg2: memref<8x1xf32, #tpu.memory_space<vmem>>, %arg3: memref<8x512xf32, #tpu.memory_space<vmem>>) attributes {dimension_semantics = [], scalar_prefetch = 0 : i64, scratch_operands = 0 : i64, tpu.core_type = #tpu.core_type<tc>} {
    %c0 = arith.constant 0 : index
    %c0_0 = arith.constant 0 : index
    %0 = vector.load %arg0[%c0, %c0_0] : memref<8x27xf32, #tpu.memory_space<vmem>>, vector<8x27xf32>
    %c0_1 = arith.constant 0 : index
    %c0_2 = arith.constant 0 : index
    %1 = vector.load %arg1[%c0_1, %c0_2] : memref<27x512xf32, #tpu.memory_space<vmem>>, vector<27x512xf32>
    %cst = arith.constant dense<0.000000e+00> : vector<8x512xf32>
    %2 = tpu.matmul %0, %1, %cst {dimension_numbers = #tpu.dot_dimension_numbers<[1], [0], [0], [1], [0, 0, 1, 1], [], []>} : vector<8x27xf32>, vector<27x512xf32>, vector<8x512xf32> -> vector<8x512xf32>
    %c0_3 = arith.constant 0 : index
    %c0_4 = arith.constant 0 : index
    %3 = vector.load %arg2[%c0_3, %c0_4] : memref<8x1xf32, #tpu.memory_space<vmem>>, vector<8x1xf32>
    %4 = vector.broadcast %3 : vector<8x1xf32> to vector<8x512xf32>
    %5 = arith.addf %2, %4 : vector<8x512xf32>
    %c0_5 = arith.constant 0 : index
    %c0_6 = arith.constant 0 : index
    %6 = vector.load %arg3[%c0_5, %c0_6] : memref<8x512xf32, #tpu.memory_space<vmem>>, vector<8x512xf32>
    tpu.vector_store %arg3[%c0_5, %c0_6], %5 {strides = array<i32>} : memref<8x512xf32, #tpu.memory_space<vmem>>, vector<8x512xf32>,
    return
  }
}

</mosaic_0001>

<bundles_post_ra>
// kernel: tpu_custom_call.1
= control target key start
LH: loop header
LB: loop body
LE: loop exit
PB: predicated region body
PF: predicated region fallthrough
CT: control target
= control target key end

     0   :  { %8 = vsyncpa [#allocation3], 0  ;;  %s381_s0 = inlined_call_operand.vmem [shape: f32[8,27], index: 0, kind: input, shape index: {}]   ;;  %s382_s1 = inlined_call_operand.hbm [shape: f32[27,512], index: 1, kind: input, shape index: {}]   ;;  %s383_s2 = inlined_call_operand.vmem [shape: f32[8,1], index: 2, kind: input, shape index: {}]   ;;  %s384_s3 = inlined_call_operand.hbm [shape: f32[8,512], index: 3, kind: output, shape index: {}]  }
   0x1   :  { %9 = vsyncpa [#allocation4], 0  ;;  %s312_s12 = smov [#allocation2]   ;;  %s264_s16 = scalar_lea.hbm %s382_s1, 2048 }
   0x2   :  { %s17_s13 = sshll.u32 %s312_s12, 4  ;;  %p265_p0 = scmp.ne.s32.totalorder %s382_s1, %s264_s16  ;;  %s18_s13 = int_to_ptr.vmem [resolvable:$true] %s17_s13 }
   0x3   :  { %p268_p1 = scmp.lt.u32.totalorder %s264_s16, %s382_s1 }
   0x5   :  { %p270_p2 = pnand %p268_p1, %p265_p0 }
   0x7   :  { %273 = shalt.err (!%p270_p2)
}
   0x8   :  { %s274_s21 = scalar_lea.vmem %s18_s13, 2048  ;;  %p279_p4 = scmp.lt.s32.totalorder %s18_s13, %s18_s13 }
   0x9   :  { %p275_p3 = scmp.ne.s32.totalorder %s18_s13, %s274_s21  ;;  %p280_p5 = scmp.lt.s32.totalorder %s274_s21, %s274_s21 }
   0xb   :  { %p281_p6 = por %p280_p5, %p279_p4 }
   0xd   :  { %p282_p7 = pnand %p281_p6, %p275_p3 }
   0xf   :  { %285 = shalt.err (!%p282_p7)
}
  0x10   :  { %s313_s22 = smov 512   ;;  %s314_s23 = smov 32  }
  0x11   :  { %23 = dma.hbm_to_vmem [thread:$0]  %s382_s1, 2048, %s18_s13, [#allocation3], %s313_s22, %s313_s22, %s314_s23  }
  0x12   :  { %308 = dma.done.wait [#allocation3], 2048  }
  0x13   :  { %309 = vsyncadd [#allocation3], 4294965248  ;;  %v315_v0 = vmov 0.0   ;;  %v316_v1 = vmov 0   ;;  %vm56_vm0 = vcmask 1042432   ;;  %vm317_vm1 = vmmov 1  }
  0x14   :  { %133 = vmatprep.mubr.f32.mxu0 %v315_v0  ;;  %204 = vmatprep.mubr.f32.mxu1 %v315_v0  ;;  %vm351_vm2 = vmpackc.low %vm56_vm0, %vm317_vm1  ;;  %v31_v3 = vld [vmem:[#allocation2 + $0x8] sm:$0xff]  ;;  %v33_v5 = vld [vmem:[#allocation2 + $0x18] sm:$0xff]  ;;  %vm52_vm3 = vcmask 220160  }
  0x15   :  { %263 = vset.pattern.permute.xlu0 %v316_v1  ;;  %v35_v4 = vld [vmem:[#allocation2 + $0x28] sm:$0xff]  ;;  %v37_v7 = vld [vmem:[#allocation2 + $0x38] sm:$0xff]  ;;  %v30_v8 = vld [vmem:[#allocation2] sm:$0xff] }
  0x16   :  { %v236_v6 = vpack.c.bf16 %v35_v4, %v31_v3  ;;  %v34_v9 = vld [vmem:[#allocation2 + $0x20] sm:$0xff]  ;;  %v246_v10 = vpack.c.bf16 %v37_v7, %v33_v5  ;;  %v32_v12 = vld [vmem:[#allocation2 + $0x10] sm:$0xff]  ;;  %v39_v14 = vld [vmem:[#allocation2 + $0x48] sm:$0xff] }
  0x17   :  { %v238_v11 = vpack.c.bf16 %v34_v9, %v30_v8  ;;  %v36_v13 = vld [vmem:[#allocation2 + $0x30] sm:$0xff]  ;;  %v43_v16 = vld [vmem:[#allocation2 + $0x68] sm:$0x7]  ;;  %v41_v17 = vld [vmem:[#allocation2 + $0x58] sm:$0xff] }
  0x18   :  { %237 = vmatprep.subr.bf16.mxu0 %v236_v6  ;;  %v248_v15 = vpack.c.bf16 %v36_v13, %v32_v12  ;;  %v45_v18 = vld [vmem:[#allocation2 + $0x78] sm:$0x7]  ;;  %247 = vmatprep.subr.bf16.mxu1 %v246_v10  ;;  %v240_v19 = vpack.c.bf16 %v43_v16, %v39_v14  ;;  %v38_v21 = vld [vmem:[#allocation2 + $0x40] sm:$0xff]  ;;  %v40_v23 = vld [vmem:[#allocation2 + $0x50] sm:$0xff] }
  0x19   :  { %239 = vmatpush1.bf16.msra.mxu0 %v238_v11  ;;  %v250_v20 = vpack.c.bf16 %v45_v18, %v41_v17  ;;  %v42_v22 = vld [vmem:[#allocation2 + $0x60] sm:$0x7]  ;;  %v44_v25 = vld [vmem:[#allocation2 + $0x70] sm:$0x7] }
  0x1a   :  { %249 = vmatpush1.bf16.msra.mxu1 %v248_v15  ;;  %v243_v24 = vpack.c.bf16 %v42_v22, %v38_v21  ;;  %v46_v26 = vld [vmem:[%s383_s2] sm:$0xff]  ;;  %242 = vmatprep.subr.msk.bf16.mxu0 %vm351_vm2, %v240_v19  ;;  %v253_v27 = vpack.c.bf16 %v44_v25, %v40_v23  ;;  %s318_s2 = smov [#allocation5]  }
  0x1b   :  { %252 = vmatprep.subr.msk.bf16.mxu1 %vm351_vm2, %v250_v20  ;;  %49 = vperm.xlu0 %263, %v46_v26   ;;  %v29_v28 = vld [vmem:[%s381_s0] sm:$0xff]  ;;  %s221_s29 = sshll.u32 %s318_s2, 4  ;;  %s222_s29 = int_to_ptr.vmem [resolvable:$true] %s221_s29 }
  0x1c   :  { %s286_s0 = scalar_lea.vmem %s222_s29, 512  ;;  %p291_p9 = scmp.lt.s32.totalorder %s222_s29, %s222_s29 }
  0x1d   :  { %245 = vmatpush1.bf16.msk.msra.mxu0 %vm351_vm2, %v243_v24  ;;  %p287_p8 = scmp.ne.s32.totalorder %s222_s29, %s286_s0  ;;  %p292_p10 = scmp.lt.s32.totalorder %s286_s0, %s286_s0 }
  0x1e   :  { %255 = vmatpush1.bf16.msk.msra.mxu1 %vm351_vm2, %v253_v27 }
  0x1f   :  { %p293_p11 = por %p292_p10, %p291_p9 }
  0x20   :  { %232 = vmatmul.mubr.msk.f32.vlgmr.msra.gmra.mrb[0].mxu0 %vm52_vm3, %v29_v28 }
  0x21   :  { %235 = vmatmul.mubr.msk.f32.vlgmr.msra.gmra.mrb[0].mxu1 %vm52_vm3, %v29_v28  ;;  %p294_p12 = pnand %p293_p11, %p287_p8 }
  0x9a   :  { %v50_v29 = vpop.permute.xlu0 %49 }
  0xf3   :  { %v135_v30 = vpop.f32.mrb[0].mxu0 }
  0xf4   :  { %v136_v31 = vadd.f32 %v135_v30, %v50_v29  ;;  %v206_v32 = vpop.f32.mrb[0].mxu1  ;;  %v137_v33 = vpop.f32.mrb[1].mxu0 }
  0xf5   :  { %v207_v34 = vadd.f32 %v206_v32, %v50_v29  ;;  %v138_v35 = vadd.f32 %v137_v33, %v50_v29  ;;  %v208_v36 = vpop.f32.mrb[1].mxu1 }
  0xf6   :  { %211 = vst [vmem:[#allocation5] sm:$0xff] %v136_v31  ;;  %v209_v37 = vadd.f32 %v208_v36, %v50_v29 }
  0xf7   :  { %213 = vst [vmem:[#allocation5 + $0x10] sm:$0xff] %v207_v34  ;;  %212 = vst [vmem:[#allocation5 + $0x8] sm:$0xff] %v138_v35 }
  0xf8   :  { %214 = vst [vmem:[#allocation5 + $0x18] sm:$0xff] %v209_v37 }
  0xf9   :  { %297 = shalt.err (!%p294_p12)
}
  0xfa   :  { %s298_s5 = scalar_lea.hbm %s384_s3, 512 }
  0xfb   :  { %p299_p13 = scmp.ne.s32.totalorder %s384_s3, %s298_s5  ;;  %p302_p0 = scmp.lt.u32.totalorder %s298_s5, %s384_s3 }
  0xfd   :  { %p304_p1 = pnand %p302_p0, %p299_p13 }
  0xff   :  { %307 = shalt.err (!%p304_p1)
}
 0x100   :  { %224 = dma.vmem_to_hbm [thread:$0]  %s222_s29, 512, %s384_s3, [#allocation4]  }
 0x101   :  { %310 = dma.done.wait [#allocation4], 512  }
 0x102   :  { %311 = vsyncadd [#allocation4], 4294966784 }
 0x103   :  { %228 = vsyncpa [#allocation3], 1 }
 0x104   :  { %229 = vsyncpa [#allocation4], 1 }

</bundles_post_ra>
